<compile_context>
chip_gen: v6e
topology: v6e:2x2x1
jax: 0.10.0
libtpu: 0.0.40
codegen_flags: <defaults>
</compile_context>

<pallas_src>
import math

import jax
import jax.numpy as jnp
from jax.experimental import pallas as pl
from jax.experimental.pallas import tpu as pltpu

EPS = 1e-10


def _nalu_kernel(x_ref, wag_ref, wt_ref, o_ref):
    """One batch tile.

    x_ref:   (tb, in_p)        f32 input tile
    wag_ref: (in_p, 2*out_p)   [W_nac^T | G^T] fused, grid-invariant
    wt_ref:  (in_p, out_p)     W^T, grid-invariant
    o_ref:   (tb, out_p)       output tile
    """
    x = x_ref[...]                                            # (tb, in_p)
    out_p = o_ref.shape[-1]

    # Single MXU call for the additive path and the gate pre-activation.
    ag = jnp.dot(x, wag_ref[...],
                 preferred_element_type=jnp.float32)          # (tb, 2*out_p)
    a = ag[:, :out_p]                                         # NAC output
    g = jax.nn.sigmoid(ag[:, out_p:])                         # gate

    # Multiplicative path: exp(log(|x| + eps) @ W^T).
    log_x = jnp.log(jnp.abs(x) + EPS)                         # (tb, in_p)
    m = jnp.exp(jnp.dot(log_x, wt_ref[...],
                        preferred_element_type=jnp.float32))  # (tb, out_p)

    o_ref[...] = g * a + (1.0 - g) * m


def _round_up(x, m):
    return (x + m - 1) // m * m


def nalu_forward(x, G, W, W_hat, M_hat, *, tb=None):
    """Fused NALU forward. x: (B, in); weights: (out, in); returns (B, out)."""
    x = x.astype(jnp.float32)
    B, in_f = x.shape
    out_f = G.shape[0]

    # ---- one-time, grid-invariant weight preparation (wrapper side) --------
    # NAC tied weight computed once (not per batch tile), fused with the gate
    # weight G along the output axis, transposed to (in, out) for the MXU.
    w_nac = jnp.tanh(W_hat) * jax.nn.sigmoid(M_hat)           # (out, in)

    # Lane-dense padding: last (lane) dims -> multiples of 128.
    in_p = _round_up(in_f, 128)
    out_p = _round_up(out_f, 128)

    w_nac_p = jnp.pad(w_nac.astype(jnp.float32),
                      ((0, out_p - out_f), (0, in_p - in_f)))
    g_p = jnp.pad(G.astype(jnp.float32),
                  ((0, out_p - out_f), (0, in_p - in_f)))
    w_p = jnp.pad(W.astype(jnp.float32),
                  ((0, out_p - out_f), (0, in_p - in_f)))

    wag_t = jnp.concatenate([w_nac_p, g_p], axis=0).T         # (in_p, 2*out_p)
    w_t = w_p.T                                               # (in_p, out_p)

    # ---- batch tiling -------------------------------------------------------
    if tb is None:
        # Multiple of 8 (f32 sublane), capped at 512 rows, and >= 2 grid steps
        # whenever the batch allows (uses both TensorCores on v7x).
        tb = max(8, min(512, _round_up(pl.cdiv(B, 2), 8)))
    assert tb % 8 == 0, "batch tile must be a multiple of 8 (f32 sublane)"
    B_p = _round_up(B, tb)
    x_p = jnp.pad(x, ((0, B_p - B), (0, in_p - in_f)))

    grid = (B_p // tb,)
    y_p = pl.pallas_call(
        _nalu_kernel,
        out_shape=jax.ShapeDtypeStruct((B_p, out_p), jnp.float32),
        grid_spec=pl.GridSpec(
            grid=grid,
            in_specs=[
                pl.BlockSpec((tb, in_p), lambda i: (i, 0)),       # x tile
                pl.BlockSpec((in_p, 2 * out_p), lambda i: (0, 0)),  # [Wnac|G]^T
                pl.BlockSpec((in_p, out_p), lambda i: (0, 0)),      # W^T
            ],
            out_specs=pl.BlockSpec((tb, out_p), lambda i: (i, 0)),
        ),
        compiler_params=pltpu.CompilerParams(
            dimension_semantics=("parallel",)),
    )(x_p, wag_t, w_t)

    return y_p[:B, :out_f]


def _kaiming_uniform(key, shape, a=math.sqrt(5)):
    # PyTorch kaiming_uniform_ with fan_in = shape[1]
    fan_in = shape[1]
    gain = math.sqrt(2.0 / (1.0 + a * a))
    bound = gain * math.sqrt(3.0 / fan_in)
    return jax.random.uniform(key, shape, jnp.float32, -bound, bound)


def nalu_reference(x, G, W, W_hat, M_hat):
    w_nac = jnp.tanh(W_hat) * jax.nn.sigmoid(M_hat)
    a = x @ w_nac.T
    g = jax.nn.sigmoid(x @ G.T)
    m = jnp.exp(jnp.log(jnp.abs(x) + EPS) @ W.T)
    return g * a + (1.0 - g) * m


if __name__ == "__main__":
    in_features = 32
    out_features = 16
    batch = 16   # -> tb=8, grid=(2,)

    key = jax.random.PRNGKey(0)
    k_x, k_g, k_w, k_wh, k_mh = jax.random.split(key, 5)

    x = jax.random.normal(k_x, (batch, in_features), jnp.float32)
    G = _kaiming_uniform(k_g, (out_features, in_features))
    W = _kaiming_uniform(k_w, (out_features, in_features))
    W_hat = _kaiming_uniform(k_wh, (out_features, in_features))
    M_hat = _kaiming_uniform(k_mh, (out_features, in_features))

    y = nalu_forward(x, G, W, W_hat, M_hat)
    y = jax.block_until_ready(y)

    y_ref = nalu_reference(x, G, W, W_hat, M_hat)
    assert y.shape == (batch, out_features)
    assert jnp.allclose(y, y_ref, atol=2e-4, rtol=2e-4), "mismatch vs reference"

    print("KERNEL_OK")
</pallas_src>

<mosaic_0001>
module attributes {stable_mosaic.version = 11 : i64} {
  func.func @_nalu_kernel(%arg0: i32, %arg1: memref<8x128xf32, #tpu.memory_space<vmem>>, %arg2: memref<128x256xf32, #tpu.memory_space<vmem>>, %arg3: memref<128x128xf32, #tpu.memory_space<vmem>>, %arg4: memref<8x128xf32, #tpu.memory_space<vmem>>) attributes {dimension_semantics = [#tpu.dimension_semantics<parallel>], iteration_bounds = array<i64: 2>, scalar_prefetch = 0 : i64, scratch_operands = 0 : i64, tpu.core_type = #tpu.core_type<tc>, window_params = [{transform_indices = @transform_0, window_bounds = array<i64: 8, 128>}, {pipeline_mode = #tpu.pipeline_mode<synchronous>, transform_indices = @transform_1, window_bounds = array<i64: 128, 256>}, {pipeline_mode = #tpu.pipeline_mode<synchronous>, transform_indices = @transform_2, window_bounds = array<i64: 128, 128>}, {transform_indices = @transform_3, window_bounds = array<i64: 8, 128>}]} {
    %c0 = arith.constant 0 : index
    %c0_0 = arith.constant 0 : index
    %0 = vector.load %arg1[%c0, %c0_0] : memref<8x128xf32, #tpu.memory_space<vmem>>, vector<8x128xf32>
    %c0_1 = arith.constant 0 : index
    %c0_2 = arith.constant 0 : index
    %1 = vector.load %arg2[%c0_1, %c0_2] : memref<128x256xf32, #tpu.memory_space<vmem>>, vector<128x256xf32>
    %cst = arith.constant dense<0.000000e+00> : vector<8x256xf32>
    %2 = tpu.matmul %0, %1, %cst {dimension_numbers = #tpu.dot_dimension_numbers<[1], [0], [0], [1], [0, 0, 1, 1], [], []>} : vector<8x128xf32>, vector<128x256xf32>, vector<8x256xf32> -> vector<8x256xf32>
    %3 = vector.extract_strided_slice %2 {offsets = [0, 0], sizes = [8, 128], strides = [1, 1]} : vector<8x256xf32> to vector<8x128xf32>
    %4 = vector.extract_strided_slice %2 {offsets = [0, 128], sizes = [8, 128], strides = [1, 1]} : vector<8x256xf32> to vector<8x128xf32>
    %5 = arith.negf %4 : vector<8x128xf32>
    %6 = math.exp %5 : vector<8x128xf32>
    %cst_3 = arith.constant 1.000000e+00 : f32
    %7 = vector.broadcast %cst_3 : f32 to vector<8x128xf32>
    %8 = arith.addf %7, %6 : vector<8x128xf32>
    %9 = arith.divf %7, %8 : vector<8x128xf32>
    %10 = math.absf %0 : vector<8x128xf32>
    %cst_4 = arith.constant 1.000000e-10 : f32
    %11 = vector.broadcast %cst_4 : f32 to vector<8x128xf32>
    %12 = arith.addf %10, %11 : vector<8x128xf32>
    %13 = math.log %12 : vector<8x128xf32>
    %c0_5 = arith.constant 0 : index
    %c0_6 = arith.constant 0 : index
    %14 = vector.load %arg3[%c0_5, %c0_6] : memref<128x128xf32, #tpu.memory_space<vmem>>, vector<128x128xf32>
    %cst_7 = arith.constant dense<0.000000e+00> : vector<8x128xf32>
    %15 = tpu.matmul %13, %14, %cst_7 {dimension_numbers = #tpu.dot_dimension_numbers<[1], [0], [0], [1], [0, 0, 1, 1], [], []>} : vector<8x128xf32>, vector<128x128xf32>, vector<8x128xf32> -> vector<8x128xf32>
    %16 = math.exp %15 : vector<8x128xf32>
    %17 = arith.mulf %9, %3 : vector<8x128xf32>
    %cst_8 = arith.constant 1.000000e+00 : f32
    %18 = vector.broadcast %cst_8 : f32 to vector<8x128xf32>
    %19 = arith.subf %18, %9 : vector<8x128xf32>
    %20 = arith.mulf %19, %16 : vector<8x128xf32>
    %21 = arith.addf %17, %20 : vector<8x128xf32>
    %c0_9 = arith.constant 0 : index
    %c0_10 = arith.constant 0 : index
    %22 = vector.load %arg4[%c0_9, %c0_10] : memref<8x128xf32, #tpu.memory_space<vmem>>, vector<8x128xf32>
    tpu.vector_store %arg4[%c0_9, %c0_10], %21 {strides = array<i32>} : memref<8x128xf32, #tpu.memory_space<vmem>>, vector<8x128xf32>,
    return
  }
  func.func @transform_0(%arg0: i32) -> (i32, i32) {
    %c0_i32 = arith.constant 0 : i32
    %c0_i32_0 = arith.constant 0 : i32
    return %arg0, %c0_i32 : i32, i32
  }
  func.func @transform_1(%arg0: i32) -> (i32, i32) {
    %c0_i32 = arith.constant 0 : i32
    %c0_i32_0 = arith.constant 0 : i32
    %c0_i32_1 = arith.constant 0 : i32
    return %c0_i32, %c0_i32_0 : i32, i32
  }
  func.func @transform_2(%arg0: i32) -> (i32, i32) {
    %c0_i32 = arith.constant 0 : i32
    %c0_i32_0 = arith.constant 0 : i32
    %c0_i32_1 = arith.constant 0 : i32
    return %c0_i32, %c0_i32_0 : i32, i32
  }
  func.func @transform_3(%arg0: i32) -> (i32, i32) {
    %c0_i32 = arith.constant 0 : i32
    %c0_i32_0 = arith.constant 0 : i32
    return %arg0, %c0_i32 : i32, i32
  }
}

</mosaic_0001>

<bundles_post_ra>
// kernel: tpu_custom_call.1
= control target key start
LH: loop header
LB: loop body
LE: loop exit
PB: predicated region body
PF: predicated region fallthrough
CT: control target
= control target key end

     0   :  { %8 = vsyncpa [#allocation3], 0  ;;  %s1049_s0 = inlined_call_operand.hbm [shape: f32[16,128], index: 0, kind: input, shape index: {}]   ;;  %s1050_s1 = inlined_call_operand.hbm [shape: f32[128,256], index: 1, kind: input, shape index: {}]   ;;  %s1051_s2 = inlined_call_operand.hbm [shape: f32[128,128], index: 2, kind: input, shape index: {}]   ;;  %s1052_s3 = inlined_call_operand.hbm [shape: f32[16,128], index: 3, kind: output, shape index: {}]  }
   0x1   :  { %10 = vsyncpa [#allocation3 + $0x1], 0 }
   0x2   :  { %11 = vsyncpa [#allocation6], 0 }
   0x3   :  { %12 = vsyncpa [#allocation4], 0 }
   0x4   :  { %14 = vsyncpa [#allocation4 + $0x1], 0  ;;  %s855_s12 = smov 0   ;;  %s857_s13 = smov 0  }
   0x5   :  { %s859_s14 = smov 0   ;;  %s861_s15 = smov 0  }
   0x6 LB: > { %s876_s16 = sadd.s32 4294967295, %s823_s15   ;;  %s525_s17 = sadd.s32 4294967294, %s823_s15   ;;  %s823_s15 = sphi %s861_s15, %s1074_s15   ;;  %s819_s14 = sphi %s859_s14, %s1073_s14   ;;  %s815_s13 = sphi %s857_s13, %s1072_s13   ;;  %s811_s12 = sphi %s855_s12, %s1071_s12  }
   0x7   : > { %p40_p0 = scmp.ne.s32.totalorder %s815_s13, %s811_s12  ;;  %p1053_p1 = scmp.eq.s32.totalorder %s876_s16, 0 }
   0x8   : > { %p112_p3 = scmp.eq.s32.totalorder %s525_s17, 1  ;;  %p526_p5 = scmp.ge.s32.totalorder %s823_s15, 1 }
   0x9   : > { %p885_p4 = por %p1053_p1, %p40_p0  ;;  %p119_p7 = scmp.lt.s32.totalorder %s823_s15, 3 }
   0xa   : > { %p890_p6 = por %p112_p3, %p40_p0  ;;  %s825_s21 = smov [#allocation5]  }
   0xb   : > { %s1057_s18 = scalar_select %p885_p4, 1, 0 }
   0xc   : > { %s1058_s19 = scalar_select %p890_p6, 1, 0 }
   0xd   : > { %p895_p8 = pnand %p526_p5, %p119_p7  ;;  %s131_s22 = sshll.u32 %s825_s21, 4  ;;  %s132_s22 = int_to_ptr.vmem [resolvable:$true] %s131_s22 }
   0xe   : > { %s826_s24 = smov [#allocation7]   ;;  %s686_s26 = scalar_lea.vmem %s132_s22, 4096 }
   0xf   : > { %s1059_s20 = scalar_select %p895_p8, 1, 0 }
  0x10   : > { %p606_p9 = pneg %p895_p8  ;;  %s144_s25 = sshll.u32 %s826_s24, 4  ;;  %s145_s25 = int_to_ptr.vmem [resolvable:$true] %s144_s25 }
  0x11   : > { %p687_p13 = scmp.ne.s32.totalorder %s132_s22, %s686_s26  ;;  %p694_p5 = scmp.lt.s32.totalorder %s132_s22, %s132_s22 }
  0x12   : > { %p904_p11 = pnand %p606_p9, %p1053_p1  ;;  %p695_p7 = scmp.lt.s32.totalorder %s686_s26, %s686_s26 }
  0x14   : > { %p677_p12 = pneg %p904_p11  ;;  %p696_p10 = por %p695_p7, %p694_p5 }
  0x16   : > { %p689_p0 = pnand %p687_p13, %p677_p12 }
  0x18   : > { %p690_p3 = pneg %p689_p0 }
  0x1a   : > { %p697_p9 = pnand %p696_p10, %p690_p3 }
  0x1c   : > { %700 = shalt.err (!%p697_p9)
}
  0x1d   : > { %s827_s27 = smov 256   ;;  %s828_s28 = smov 16  }
  0x1e   : > { %609 = dma.hbm_to_vmem [thread:$0]  (!%p904_p11), %s1050_s1, 4096, %s132_s22, [#allocation6], %s827_s27, %s827_s27, %s828_s28  }
  0x1f   : > { %s712_s4 = scalar_lea.vmem %s145_s25, 2048  ;;  %p720_p2 = scmp.lt.s32.totalorder %s145_s25, %s145_s25 }
  0x20   : > { %p713_p1 = scmp.ne.s32.totalorder %s145_s25, %s712_s4  ;;  %p721_p6 = scmp.lt.s32.totalorder %s712_s4, %s712_s4 }
  0x22   : > { %p715_p13 = pnand %p713_p1, %p677_p12  ;;  %p722_p5 = por %p721_p6, %p720_p2 }
  0x24   : > { %p716_p0 = pneg %p715_p13 }
  0x26   : > { %p723_p10 = pnand %p722_p5, %p716_p0 }
  0x28   : > { %726 = shalt.err (!%p723_p10)
}
  0x29   : > { %s829_s5 = smov 128   ;;  %s830_s6 = smov 8  }
  0x2a   : > { %612 = dma.hbm_to_vmem [thread:$0]  (!%p904_p11), %s1051_s2, 2048, %s145_s25, [#allocation6], %s829_s5, %s829_s5, %s830_s6  }
  0x2b   : > { %s927_s9 = sadd.s32 1, %s823_s15   ;;  %s27_s11 = sadd.s32 1, %s819_s14 }
  0x2c   : > { %s24_s10 = ssub.s32 %s823_s15, %s927_s9  ;;  %p34_p2 = scmp.ne.s32.totalorder %s819_s14, %s815_s13 }
  0x2d   : > { %p25_p1 = scmp.eq.s32.totalorder %s24_s10, 0  ;;  %p35_p6 = scmp.eq.s32.totalorder %s823_s15, 0 }
  0x2e   : > { %p1061_p3 = scmp.eq.s32.totalorder %s876_s16, 1  ;;  %p623_p9 = scmp.lt.s32.totalorder %s823_s15, 2 }
  0x2f   : > { %s936_s17 = scalar_select %p25_p1, %s819_s14, %s27_s11  }
  0x30   : > { %p36_p12 = por %p35_p6, %p34_p2  ;;  %p940_p7 = por %p1061_p3, %p34_p2 }
  0x31   : > { %s158_s22 = sand.u32 1, %s819_s14   ;;  %s531_s24 = sshll.u32 %s823_s15, 7 }
  0x32   : > { %s1062_s21 = scalar_select %p940_p7, 1, 0 }
  0x33   : > { %s530_s23 = sshll.u32 %s158_s22, 3  ;;  %s950_s27 = scalar_lea.hbm %s1049_s0, %s531_s24 }
  0x34   : > { %s162_s28 = scalar_lea.vmem [#allocation2], %s530_s23  ;;  %p952_p11 = pnand %p623_p9, %p36_p12 }
  0x35   : > { %s169_s29 = sshll.u32 %s162_s28, 4  ;;  %s159_s4 = scalar_lea.sflag [#allocation3], %s158_s22  ;;  %s170_s29 = int_to_ptr.vmem [resolvable:$true] %s169_s29 }
  0x36   : > { %s727_s5 = scalar_lea.hbm %s950_s27, 128  ;;  %p729_p0 = pneg %p952_p11 }
  0x37   : > { %p728_p13 = scmp.ne.s32.totalorder %s950_s27, %s727_s5  ;;  %s732_s8 = scalar_lea.hbm %s1049_s0, 256 }
  0x38   : > { %p733_p1 = scmp.lt.s32.totalorder %s950_s27, %s1049_s0  ;;  %p734_p2 = scmp.lt.s32.totalorder %s732_s8, %s727_s5 }
  0x39   : > { %p730_p5 = pnand %p729_p0, %p728_p13 }
  0x3a   : > { %p735_p6 = por %p734_p2, %p733_p1 }
  0x3b   : > { %p731_p10 = pneg %p730_p5 }
  0x3d   : > { %p736_p12 = pnand %p735_p6, %p731_p10 }
  0x3f   : > { %739 = shalt.err (!%p736_p12)
}
  0x40   : > { %s740_s23 = scalar_lea.vmem %s170_s29, 128  ;;  %s831_s22 = smov [#allocation2]  }
  0x41   : > { %p741_p3 = scmp.ne.s32.totalorder %s170_s29, %s740_s23  ;;  %s745_s24 = sshll.u32 %s831_s22, 4  ;;  %s746_s24 = int_to_ptr.vmem [resolvable:$false] %s745_s24 }
  0x42   : > { %s747_s25 = scalar_lea.vmem %s746_s24, 256  ;;  %p748_p13 = scmp.lt.s32.totalorder %s170_s29, %s746_s24 }
  0x43   : > { %p743_p9 = pnand %p741_p3, %p729_p0  ;;  %p749_p5 = scmp.lt.s32.totalorder %s747_s25, %s740_s23 }
  0x45   : > { %p744_p7 = pneg %p743_p9  ;;  %p750_p4 = por %p749_p5, %p748_p13 }
  0x47   : > { %p751_p8 = pnand %p750_p4, %p744_p7 }
  0x49   : > { %754 = shalt.err (!%p751_p8)
}
  0x4a   : > { %616 = dma.hbm_to_vmem [thread:$0]  (!%p952_p11), %s950_s27, 128, %s170_s29, %s159_s4  }
  0x4b   : > { %p1064_p10 = scmp.ne.s32.totalorder %s1059_s20, 0 }
  0x4c   : > { %s973_s26 = sand.u32 (!%p1064_p10), 1, %s815_s13   ;;  %p1065_p4 = scmp.ne.s32.totalorder (!%p1064_p10), %s1057_s18, 0 }
  0x4d   : > { %178 = sbr.rel (%p1064_p10) target bundleno = 366 (0x16e), region = 32  ;;  %s533_s28 = sshll.u32 (!%p1064_p10), %s973_s26, 3 }
  0x4e   : > { %s181_s5 = scalar_lea.sflag (!%p1064_p10), [#allocation3], %s973_s26  ;;  %s979_s6 = scalar_lea.vmem (!%p1064_p10), [#allocation2], %s533_s28 }
  0x52   : > { %798 = dma.done.wait (%p1065_p4), %s181_s5, 128  }
  0x53   : > { %800 = vsyncadd (%p1065_p4), %s181_s5, 4294967168  ;;  %p1066_p8 = scmp.eq.s32.totalorder %s876_s16, 0 }
  0x55   : > { %802 = dma.done.wait (%p1066_p8), [#allocation6], 6144   ;;  %p1067_p7 = pmov %p1066_p8 }
  0x56   : > { %v832_v0 = vmov 0.0   ;;  %vm833_vm0 = vmmov 0   ;;  %v247_v1 = vld [vmem:[#allocation5 + $0xf8] sm:$0xff]  ;;  %v246_v2 = vld [vmem:[#allocation5 + $0xf0] sm:$0xff]  ;;  %v245_v3 = vld [vmem:[#allocation5 + $0xe8] sm:$0xff]  ;;  %s539_s18 = sshll.u32 %s876_s16, 7 }
  0x57   : > { %804 = vsyncadd (%p1067_p7), [#allocation6], 4294961152  ;;  %559 = vmatprep.subr.mxu1 %v832_v0  ;;  %312 = vmatprep.mubr.f32.mxu0 %v832_v0  ;;  %v244_v4 = vld [vmem:[#allocation5 + $0xe0] sm:$0xff]  ;;  %v243_v5 = vld [vmem:[#allocation5 + $0xd8] sm:$0xff]  ;;  %s214_s20 = scalar_lea.vmem [#allocation8], %s533_s28  ;;  %s434_s4 = scalar_lea.hbm %s1052_s3, %s539_s18 }
  0x58   : > { %591 = vmatprep.mubr.msk.f32.mxu1 %vm833_vm0, %v832_v0  ;;  %248 = vmatprep.subr.mxu0 %v247_v1  ;;  %v242_v6 = vld [vmem:[#allocation5 + $0xd0] sm:$0xff]  ;;  %v241_v7 = vld [vmem:[#allocation5 + $0xc8] sm:$0xff]  ;;  %v240_v8 = vld [vmem:[#allocation5 + $0xc0] sm:$0xff]  ;;  %s436_s27 = sshll.u32 %s214_s20, 4  ;;  %s423_s7 = scalar_lea.sflag [#allocation4], %s973_s26  ;;  %s437_s27 = int_to_ptr.vmem [resolvable:$true] %s436_s27 }
  0x59   : > { %249 = vmatpush1.msra.mxu0 %v246_v2  ;;  %v239_v9 = vld [vmem:[#allocation5 + $0xb8] sm:$0xff]  ;;  %v238_v11 = vld [vmem:[#allocation5 + $0xb0] sm:$0xff]  ;;  %v237_v13 = vld [vmem:[#allocation5 + $0xa8] sm:$0xff]  ;;  %s755_s8 = scalar_lea.vmem %s437_s27, 128  ;;  %p1068_p0 = scmp.ne.s32.totalorder %s1062_s21, 0 }
  0x5a   : > { %250 = vmatprep.subr.mxu0 %v245_v3  ;;  %v344_v10 = vld [vmem:[#allocation7 + $0x78] sm:$0xff]  ;;  %v343_v12 = vld [vmem:[#allocation7 + $0x70] sm:$0xff]  ;;  %v342_v14 = vld [vmem:[#allocation7 + $0x68] sm:$0xff]  ;;  %p756_p11 = scmp.ne.s32.totalorder %s437_s27, %s755_s8  ;;  %s834_s10 = smov [#allocation8]  }
  0x5b   : > { %251 = vmatpush1.msra.mxu0 %v244_v4  ;;  %560 = vmatpush3.msra.mxu1 %v344_v10  ;;  %v236_v15 = vld [vmem:[#allocation5 + $0xa0] sm:$0xff]  ;;  %v235_v16 = vld [vmem:[#allocation5 + $0x98] sm:$0xff]  ;;  %v234_v18 = vld [vmem:[#allocation5 + $0x90] sm:$0xff]  ;;  %s759_s16 = sshll.u32 %s834_s10, 4  ;;  %s760_s16 = int_to_ptr.vmem [resolvable:$false] %s759_s16 }
  0x5c   : > { %252 = vmatprep.subr.mxu0 %v243_v5  ;;  %561 = vmatprep.subr.mxu1 %v832_v0  ;;  %v341_v17 = vld [vmem:[#allocation7 + $0x60] sm:$0xff]  ;;  %v233_v19 = vld [vmem:[#allocation5 + $0x88] sm:$0xff]  ;;  %v340_v20 = vld [vmem:[#allocation7 + $0x58] sm:$0xff]  ;;  %p757_p1 = pnand %p756_p11, %p1068_p0  ;;  %s761_s11 = scalar_lea.vmem %s760_s16, 256 }
  0x5d   : > { %253 = vmatpush1.msra.mxu0 %v242_v6  ;;  %562 = vmatpush3.msra.mxu1 %v343_v12  ;;  %v232_v21 = vld [vmem:[#allocation5 + $0x80] sm:$0xff]  ;;  %v996_v22 = vld [vmem:[%s979_s6] sm:$0xff]  ;;  %v229_v27 = vld [vmem:[#allocation5 + $0x68] sm:$0xff]  ;;  %p762_p6 = scmp.lt.s32.totalorder %s437_s27, %s760_s16  ;;  %p763_p12 = scmp.lt.s32.totalorder %s761_s11, %s755_s8 }
  0x5e   : > { %254 = vmatprep.subr.mxu0 %v241_v7  ;;  %563 = vmatprep.subr.mxu1 %v832_v0  ;;  %v231_v23 = vld [vmem:[#allocation5 + $0x78] sm:$0xff]  ;;  %v339_v24 = vld [vmem:[#allocation7 + $0x50] sm:$0xff]  ;;  %v325_v25 = vand.u32 2147483647, %v996_v22  ;;  %v338_v28 = vld [vmem:[#allocation7 + $0x48] sm:$0xff]  ;;  %p758_p2 = pneg %p757_p1 }
  0x5f   : > { %255 = vmatpush1.msra.mxu0 %v240_v8  ;;  %564 = vmatpush3.msra.mxu1 %v342_v14  ;;  %v230_v26 = vld [vmem:[#allocation5 + $0x70] sm:$0xff]  ;;  %v228_v30 = vld [vmem:[#allocation5 + $0x60] sm:$0xff]  ;;  %v227_v31 = vld [vmem:[#allocation5 + $0x58] sm:$0xff]  ;;  %p764_p3 = por %p763_p12, %p762_p6 }
  0x60   : > { %256 = vmatprep.subr.mxu0 %v239_v9  ;;  %565 = vmatprep.subr.mxu1 %v832_v0  ;;  %v326_v29 = vadd.f32 1e-10, %v325_v25  ;;  %v337_v32 = vld [vmem:[#allocation7 + $0x40] sm:$0xff]  ;;  %v226_v33 = vld [vmem:[#allocation5 + $0x50] sm:$0xff]  ;;  %v225_v34 = vld [vmem:[#allocation5 + $0x48] sm:$0xff] }
  0x61   : > { %257 = vmatpush1.msra.mxu0 %v238_v11  ;;  %566 = vmatpush3.msra.mxu1 %v341_v17  ;;  %v336_v35 = vld [vmem:[#allocation7 + $0x38] sm:$0xff]  ;;  %v224_v36 = vld [vmem:[#allocation5 + $0x40] sm:$0xff]  ;;  %v335_v38 = vld [vmem:[#allocation7 + $0x30] sm:$0xff]  ;;  %p765_p9 = pnand %p764_p3, %p758_p2 }
  0x62   : > { %258 = vmatprep.subr.mxu0 %v237_v13  ;;  %567 = vmatprep.subr.mxu1 %v832_v0  ;;  %667 = vlog2.f32 %v326_v29  ;;  %v223_v37 = vld [vmem:[#allocation5 + $0x38] sm:$0xff]  ;;  %v222_v39 = vld [vmem:[#allocation5 + $0x30] sm:$0xff]  ;;  %v221_v40 = vld [vmem:[#allocation5 + $0x28] sm:$0xff] }
  0x63   : > { %259 = vmatpush1.msra.mxu0 %v236_v15  ;;  %568 = vmatpush3.msra.mxu1 %v340_v20  ;;  %v334_v41 = vld [vmem:[#allocation7 + $0x28] sm:$0xff]  ;;  %v220_v42 = vld [vmem:[#allocation5 + $0x20] sm:$0xff]  ;;  %v219_v43 = vld [vmem:[#allocation5 + $0x18] sm:$0xff] }
  0x64   : > { %260 = vmatprep.subr.mxu0 %v235_v16  ;;  %569 = vmatprep.subr.mxu1 %v832_v0  ;;  %v333_v44 = vld [vmem:[#allocation7 + $0x20] sm:$0xff]  ;;  %v218_v45 = vld [vmem:[#allocation5 + $0x10] sm:$0xff]  ;;  %v217_v46 = vld [vmem:[#allocation5 + $0x8] sm:$0xff] }
  0x65   : > { %261 = vmatpush1.msra.mxu0 %v234_v18  ;;  %570 = vmatpush3.msra.mxu1 %v339_v24  ;;  %v332_v47 = vld [vmem:[#allocation7 + $0x18] sm:$0xff]  ;;  %v216_v48 = vld [vmem:[#allocation5] sm:$0xff]  ;;  %v331_v49 = vld [vmem:[#allocation7 + $0x10] sm:$0xff] }
  0x66   : > { %262 = vmatprep.subr.mxu0 %v233_v19  ;;  %571 = vmatprep.subr.mxu1 %v832_v0  ;;  %v330_v51 = vld [vmem:[#allocation7 + $0x8] sm:$0xff]  ;;  %v329_v52 = vld [vmem:[#allocation7] sm:$0xff] }
  0x67   : > { %263 = vmatpush1.msra.mxu0 %v232_v21  ;;  %572 = vmatpush3.msra.mxu1 %v338_v28 }
  0x68   : > { %264 = vmatprep.subr.mxu0 %v231_v23  ;;  %573 = vmatprep.subr.mxu1 %v832_v0 }
  0x69   : > { %265 = vmatpush1.msra.mxu0 %v230_v26  ;;  %574 = vmatpush3.msra.mxu1 %v337_v32 }
  0x6a   : > { %266 = vmatprep.subr.mxu0 %v229_v27  ;;  %575 = vmatprep.subr.mxu1 %v832_v0 }
  0x6b   : > { %267 = vmatpush1.msra.mxu0 %v228_v30  ;;  %576 = vmatpush3.msra.mxu1 %v336_v35 }
  0x6c   : > { %268 = vmatprep.subr.mxu0 %v227_v31  ;;  %577 = vmatprep.subr.mxu1 %v832_v0 }
  0x6d   : > { %269 = vmatpush1.msra.mxu0 %v226_v33  ;;  %578 = vmatpush3.msra.mxu1 %v335_v38 }
  0x6e   : > { %270 = vmatprep.subr.mxu0 %v225_v34  ;;  %579 = vmatprep.subr.mxu1 %v832_v0 }
  0x6f   : > { %271 = vmatpush1.msra.mxu0 %v224_v36  ;;  %580 = vmatpush3.msra.mxu1 %v334_v41  ;;  %v668_v50 = vpop.eup %667 }
  0x70   : > { %272 = vmatprep.subr.mxu0 %v223_v37  ;;  %581 = vmatprep.subr.mxu1 %v832_v0  ;;  %v328_v53 = vmul.f32 0.6931472, %v668_v50 }
  0x71   : > { %273 = vmatpush1.msra.mxu0 %v222_v39  ;;  %582 = vmatpush3.msra.mxu1 %v333_v44 }
  0x72   : > { %274 = vmatprep.subr.mxu0 %v221_v40  ;;  %583 = vmatprep.subr.mxu1 %v832_v0 }
  0x73   : > { %275 = vmatpush1.msra.mxu0 %v220_v42  ;;  %584 = vmatpush3.msra.mxu1 %v332_v47 }
  0x74   : > { %276 = vmatprep.subr.mxu0 %v219_v43  ;;  %585 = vmatprep.subr.mxu1 %v832_v0 }
  0x75   : > { %277 = vmatpush1.msra.mxu0 %v218_v45  ;;  %586 = vmatpush3.msra.mxu1 %v331_v49 }
  0x76   : > { %278 = vmatprep.subr.mxu0 %v217_v46  ;;  %587 = vmatprep.subr.mxu1 %v832_v0 }
  0x77   : > { %279 = vmatpush1.msra.mxu0 %v216_v48  ;;  %588 = vmatpush3.msra.mxu1 %v330_v51 }
  0x78   : > { %313 = vmatmul.mubr.f32.vlgmr.msra.gmra.mxu0 %v996_v22  ;;  %589 = vmatprep.subr.mxu1 %v832_v0 }
  0x79   : > { %590 = vmatpush3.msra.mxu1 %v329_v52 }
  0x7a   : > { %592 = vmatmul.mubr.f32.vlgmr.msra.gmra.mxu1 %v328_v53 }
 0x138   : > { %v314_v54 = vpop.f32.mrf.mxu0 }
 0x13a   : > { %v316_v55 = vpop.f32.mrf.mxu0  ;;  %v411_v57 = vpop.f32.mrf.mxu1 }
 0x13b   : > { %v537_v56 = vmul.f32 -1.442695, %v316_v55  ;;  %v415_v59 = vmul.f32 1.442695, %v411_v57 }
 0x13c   : > { %v593_v58 = vpop.f32.mrf.mxu1 }
 0x13d   : > { %669 = vpow2.f32 %v537_v56 }
 0x13e   : > { %671 = vpow2.f32 %v415_v59 }
 0x14a   : > { %v670_v60 = vpop.eup %669 }
 0x14b   : > { %v322_v61 = vadd.f32 1.0, %v670_v60  ;;  %v672_v62 = vpop.eup %671 }
 0x14d   : > { %673 = vrcp.f32 %v322_v61 }
 0x15a   : > { %v674_v63 = vpop.eup %673 }
 0x15b   : > { %v418_v0 = vsub.f32 1.0, %v674_v63  ;;  %v417_v1 = vmul.f32 %v674_v63, %v314_v54 }
 0x15d   : > { %v419_v2 = vmul.f32 %v672_v62, %v418_v0 }
 0x15f   : > { %v420_v3 = vadd.f32 %v419_v2, %v417_v1 }
 0x161   : > { %421 = vst [vmem:[%s214_s20] sm:$0xff] %v420_v3 }
 0x162   : > { %768 = shalt.err (!%p765_p9)
}
 0x163   : > { %s769_s23 = scalar_lea.hbm %s434_s4, 128  ;;  %s773_s25 = scalar_lea.hbm %s1052_s3, 256 }
 0x164   : > { %p770_p13 = scmp.ne.s32.totalorder %s434_s4, %s769_s23  ;;  %p774_p4 = scmp.lt.s32.totalorder %s434_s4, %s1052_s3 }
 0x165   : > { %p775_p8 = scmp.lt.s32.totalorder %s773_s25, %s769_s23 }
 0x166   : > { %p771_p5 = pnand %p770_p13, %p1068_p0 }
 0x167   : > { %p776_p7 = por %p775_p8, %p774_p4 }
 0x168   : > { %p772_p10 = pneg %p771_p5 }
 0x16a   : > { %p777_p11 = pnand %p776_p7, %p772_p10 }
 0x16c   : > { %780 = shalt.err (!%p777_p11)
}
 0x16d   : > { %604 = dma.vmem_to_hbm [thread:$0]  (%p1068_p0), %s437_s27, 128, %s434_s4, %s423_s7  }
 0x16e PF: > { %s448_s5 = sand.u32 1, %s811_s12   ;;  %p1069_p1 = scmp.ne.s32.totalorder %s1058_s19, 0 }
 0x16f   : > { %p1070_p2 = scmp.ge.s32.totalorder %s823_s15, 2  ;;  %s449_s6 = scalar_lea.sflag [#allocation4], %s448_s5 }
 0x171   : > { %p618_p6 = pnand %p1070_p2, %p1069_p1 }
 0x173   : > { %p619_p12 = pneg %p618_p6 }
 0x175   : > { %806 = dma.done.wait (%p619_p12), %s449_s6, 128  }
 0x176   : > { %808 = vsyncadd (%p619_p12), %s449_s6, 4294967168  ;;  %p17_p3 = scmp.ge.s32.totalorder %s927_s9, 4   ;;  %s1071_s12 = smov %s815_s13 }
 0x177   : > { %s1072_s13 = smov %s819_s14  ;;  %s1073_s14 = smov %s936_s17 }
 0x178   : > { %s1074_s15 = smov %s927_s9  ;;  %19 = sbr.rel (!%p17_p3) target bundleno = 6 (0x6), region = 85 }
 0x17d   :  { %454 = vsyncpa [#allocation3], 1 }
 0x17e   :  { %456 = vsyncpa [#allocation3 + $0x1], 1 }
 0x17f   :  { %457 = vsyncpa [#allocation6], 1 }
 0x180   :  { %458 = vsyncpa [#allocation4], 1 }
 0x181   :  { %460 = vsyncpa [#allocation4 + $0x1], 1 }

</bundles_post_ra>
